<compile_context>
chip_gen: v6e
topology: v6e:2x2x1
jax: 0.10.0
libtpu: 0.0.40
codegen_flags: <defaults>
</compile_context>

<pallas_src>
import functools

import jax
import jax.numpy as jnp
from jax.experimental import pallas as pl
from jax.experimental.pallas import tpu as pltpu


# ----------------------------------------------------------------------------
# Fused encoder kernel.
#   h1  = relu([x | A@x] @ [Wr1; We1] + b1)              # 8 -> 256
#   p2  = h1 @ [Wr2 | We2]                                # 256 -> 2*128
#   h2  = relu(p2[:, :128] + A @ p2[:, 128:] + b2)        # -> 128
#   ph  = h2 @ [WrH_pad | WeH_pad]                        # 128 -> 2*128 (padded)
#   out = ph[:, :128] + A @ ph[:, 128:] + bH_pad          # -> 128 (mu|logstd|0...)
# Everything stays in VMEM; only `out` (lane-dense [N,128]) is written back.
# ----------------------------------------------------------------------------
def fused_encoder_kernel(x_ref, a_ref, w_ref, b_ref, o_ref, *,
                         f0, f1, f2, head_pad, w1_off, w2_off, wh_off):
    x = x_ref[...]                                   # [N, F0]  bf16
    a = a_ref[...]                                   # [N, N]   bf16 (row-normalized)

    # ---- conv1: fuse root/rel matmuls along the contraction axis -------------
    agg1 = jnp.dot(a, x, preferred_element_type=jnp.float32)        # [N, F0] f32
    x_cat = jnp.concatenate([x, agg1.astype(jnp.bfloat16)], axis=1)  # [N, 2*F0] bf16
    w1 = w_ref[w1_off:w1_off + 2 * f0, 0:f1]                         # [2*F0, F1] bf16
    h = jnp.dot(x_cat, w1, preferred_element_type=jnp.float32)       # [N, F1] f32
    h = jnp.maximum(h + b_ref[0:1, 0:f1], 0.0)

    # ---- conv2: fuse root/rel along output axis; project-first for rel -------
    w2 = w_ref[w2_off:w2_off + f1, 0:2 * f2]                         # [F1, 2*F2] bf16
    p2 = jnp.dot(h.astype(jnp.bfloat16), w2, preferred_element_type=jnp.float32)
    root2 = p2[:, 0:f2]                                              # [N, F2] f32
    rel2 = p2[:, f2:2 * f2]                                          # [N, F2] f32
    agg2 = jnp.dot(a, rel2.astype(jnp.bfloat16), preferred_element_type=jnp.float32)
    h = jnp.maximum(root2 + agg2 + b_ref[1:2, 0:f2], 0.0)            # [N, F2] f32

    # ---- fused heads (mu | logstd), padded to 128 output lanes each ----------
    wh = w_ref[wh_off:wh_off + f2, 0:2 * head_pad]                   # [F2, 2*128] bf16
    ph = jnp.dot(h.astype(jnp.bfloat16), wh, preferred_element_type=jnp.float32)
    rooth = ph[:, 0:head_pad]                                        # [N, 128] f32
    relh = ph[:, head_pad:2 * head_pad]                              # [N, 128] f32
    aggh = jnp.dot(a, relh.astype(jnp.bfloat16), preferred_element_type=jnp.float32)
    out = rooth + aggh + b_ref[2:3, 0:head_pad]                      # [N, 128] f32

    o_ref[...] = out.astype(o_ref.dtype)


def fused_encoder(x_bf16, a_bf16, w_slab, b_slab, *, f0, f1, f2, head_pad, offsets):
    n = x_bf16.shape[0]
    vmem = pl.BlockSpec(memory_space=pltpu.MemorySpace.VMEM)
    kernel = functools.partial(
        fused_encoder_kernel,
        f0=f0, f1=f1, f2=f2, head_pad=head_pad,
        w1_off=offsets[0], w2_off=offsets[1], wh_off=offsets[2])

    flops = 2 * n * (n * f0            # A @ x
                     + 2 * f0 * f1     # conv1 fused matmul
                     + f1 * 2 * f2     # conv2 fused matmul
                     + n * f2          # A @ rel2
                     + f2 * 2 * head_pad  # head fused matmul
                     + n * head_pad)   # A @ relh
    bytes_accessed = (x_bf16.size * 2 + a_bf16.size * 2 + w_slab.size * 2
                      + b_slab.size * 4 + n * head_pad * 4)

    return pl.pallas_call(
        kernel,
        out_shape=jax.ShapeDtypeStruct((n, head_pad), jnp.float32),
        in_specs=[vmem] * 4,
        out_specs=vmem,
        cost_estimate=pl.CostEstimate(flops=flops, transcendentals=0,
                                      bytes_accessed=bytes_accessed),
    )(x_bf16, a_bf16, w_slab, b_slab)


# ----------------------------------------------------------------------------
# Glue: dense mean-aggregation adjacency from edge_index (plain JAX)
# ----------------------------------------------------------------------------
def build_mean_adjacency(edge_index, num_nodes):
    """edge_index: int32 [2, E], row 0 = source j, row 1 = target i."""
    src = edge_index[0]
    tgt = edge_index[1]
    a = jnp.zeros((num_nodes, num_nodes), jnp.float32)
    a = a.at[tgt, src].add(1.0)                      # count multi-edges
    deg = jnp.sum(a, axis=1, keepdims=True)          # in-degree per target node
    return a / jnp.maximum(deg, 1.0)                 # zero rows for isolated nodes


# ----------------------------------------------------------------------------
# Parameter init (matches torch Linear-style uniform init)
# ----------------------------------------------------------------------------
def init_graphconv_params(key, f_in, f_out):
    k1, k2, k3 = jax.random.split(key, 3)
    scale = 1.0 / jnp.sqrt(jnp.float32(f_in))
    w_root = jax.random.uniform(k1, (f_in, f_out), jnp.float32, -scale, scale)
    w_rel = jax.random.uniform(k2, (f_in, f_out), jnp.float32, -scale, scale)
    b = jax.random.uniform(k3, (1, f_out), jnp.float32, -scale, scale)
    return {"w_root": w_root, "w_rel": w_rel, "b": b}


def init_encoder_params(key, num_features, out_channels):
    k1, k2, k3, k4 = jax.random.split(key, 4)
    return {
        "conv1": init_graphconv_params(k1, num_features, 128 * out_channels),
        "conv2": init_graphconv_params(k2, 128 * out_channels, 64 * out_channels),
        "conv_mu": init_graphconv_params(k3, 64 * out_channels, out_channels),
        "conv_logstd": init_graphconv_params(k4, 64 * out_channels, out_channels),
    }
    # NOTE: nn.Dropout(p=0.5) in __init__ is unused in forward -> no-op here.


# ----------------------------------------------------------------------------
# Host-side packing: 11 parameter arrays -> one bf16 weight slab + one f32
# bias slab (cuts per-DMA launch overhead; in a real deployment do this once).
# ----------------------------------------------------------------------------
def pack_encoder_params(params, head_pad=128):
    p1, p2 = params["conv1"], params["conv2"]
    pm, pls = params["conv_mu"], params["conv_logstd"]
    f0 = p1["w_root"].shape[0]
    f1 = p1["w_root"].shape[1]
    f2 = p2["w_root"].shape[1]
    c = pm["w_root"].shape[1]
    assert 2 * c <= head_pad

    # conv1: stack root/rel along the input (contraction) axis -> [2*F0, F1]
    w1 = jnp.concatenate([p1["w_root"], p1["w_rel"]], axis=0)
    # conv2: concat root/rel along the output axis -> [F1, 2*F2]
    w2 = jnp.concatenate([p2["w_root"], p2["w_rel"]], axis=1)
    # heads: fuse mu|logstd along output axis, zero-pad each of root/rel to 128
    wrh = jnp.pad(jnp.concatenate([pm["w_root"], pls["w_root"]], axis=1),
                  ((0, 0), (0, head_pad - 2 * c)))
    weh = jnp.pad(jnp.concatenate([pm["w_rel"], pls["w_rel"]], axis=1),
                  ((0, 0), (0, head_pad - 2 * c)))
    wh = jnp.concatenate([wrh, weh], axis=1)                     # [F2, 2*128]

    w_width = max(f1, 2 * f2, 2 * head_pad)

    def pad_block(w):
        rows_pad = (-w.shape[0]) % 8
        return jnp.pad(w, ((0, rows_pad), (0, w_width - w.shape[1])))

    blocks = [pad_block(w1), pad_block(w2), pad_block(wh)]
    offsets, off = [], 0
    for blk in blocks:
        offsets.append(off)
        off += blk.shape[0]
    w_slab = jnp.concatenate(blocks, axis=0).astype(jnp.bfloat16)  # [R, w_width]

    bh = jnp.pad(jnp.concatenate([pm["b"], pls["b"]], axis=1),
                 ((0, 0), (0, head_pad - 2 * c)))

    def pad_bias(b):
        return jnp.pad(b, ((0, 0), (0, w_width - b.shape[1])))

    b_slab = jnp.concatenate(
        [pad_bias(p1["b"]), pad_bias(p2["b"]), pad_bias(bh)],
        axis=0).astype(jnp.float32)                                # [3, w_width]

    meta = dict(f0=f0, f1=f1, f2=f2, c=c, head_pad=head_pad, offsets=tuple(offsets))
    return w_slab, b_slab, meta


# ----------------------------------------------------------------------------
# Encoder forward: one fused Pallas call; mu/logstd sliced off the padded head.
# ----------------------------------------------------------------------------
def encoder_forward(params, x, a_mean):
    w_slab, b_slab, meta = pack_encoder_params(params)
    out = fused_encoder(
        x.astype(jnp.bfloat16), a_mean.astype(jnp.bfloat16), w_slab, b_slab,
        f0=meta["f0"], f1=meta["f1"], f2=meta["f2"],
        head_pad=meta["head_pad"], offsets=meta["offsets"])
    c = meta["c"]
    mu = out[:, :c]
    logstd = out[:, c:2 * c]
    return mu, logstd


if __name__ == "__main__":
    key = jax.random.PRNGKey(0)
    k_x, k_e, k_p = jax.random.split(key, 3)

    num_nodes = 16          # N
    num_features = 8        # dataset.num_features
    out_channels = 2        # latent size -> layers: 8 -> 256 -> 128 -> 2

    # Node features [N, F] (float32).
    x = jax.random.normal(k_x, (num_nodes, num_features), jnp.float32)

    # Deterministic edge_index [2, E]: a ring plus a few random chords.
    nodes = jnp.arange(num_nodes, dtype=jnp.int32)
    ring_src = jnp.concatenate([nodes, (nodes + 1) % num_nodes])
    ring_tgt = jnp.concatenate([(nodes + 1) % num_nodes, nodes])
    rand_src = jax.random.randint(k_e, (8,), 0, num_nodes, jnp.int32)
    rand_tgt = (rand_src + 5) % num_nodes
    edge_index = jnp.stack([jnp.concatenate([ring_src, rand_src]),
                            jnp.concatenate([ring_tgt, rand_tgt])])

    a_mean = build_mean_adjacency(edge_index, num_nodes)
    params = init_encoder_params(k_p, num_features, out_channels)

    fwd = jax.jit(encoder_forward)
    mu, logstd = fwd(params, x, a_mean)
    jax.block_until_ready((mu, logstd))

    assert mu.shape == (num_nodes, out_channels)
    assert logstd.shape == (num_nodes, out_channels)
    assert bool(jnp.all(jnp.isfinite(mu))) and bool(jnp.all(jnp.isfinite(logstd)))
    print("KERNEL_OK")
</pallas_src>

<mosaic_0001>
module attributes {stable_mosaic.version = 11 : i64} {
  func.func @fused_encoder_kernel(%arg0: memref<16x8xbf16, #tpu.memory_space<vmem>>, %arg1: memref<16x16xbf16, #tpu.memory_space<vmem>>, %arg2: memref<400x256xbf16, #tpu.memory_space<vmem>>, %arg3: memref<3x256xf32, #tpu.memory_space<vmem>>, %arg4: memref<16x128xf32, #tpu.memory_space<vmem>>) attributes {dimension_semantics = [], scalar_prefetch = 0 : i64, scratch_operands = 0 : i64, tpu.core_type = #tpu.core_type<tc>} {
    %c0 = arith.constant 0 : index
    %c0_0 = arith.constant 0 : index
    %0 = vector.load %arg0[%c0, %c0_0] : memref<16x8xbf16, #tpu.memory_space<vmem>>, vector<16x8xbf16>
    %c0_1 = arith.constant 0 : index
    %c0_2 = arith.constant 0 : index
    %1 = vector.load %arg1[%c0_1, %c0_2] : memref<16x16xbf16, #tpu.memory_space<vmem>>, vector<16x16xbf16>
    %cst = arith.constant dense<0.000000e+00> : vector<16x8xf32>
    %2 = tpu.matmul %1, %0, %cst {dimension_numbers = #tpu.dot_dimension_numbers<[1], [0], [0], [1], [0, 0, 1, 1], [], []>} : vector<16x16xbf16>, vector<16x8xbf16>, vector<16x8xf32> -> vector<16x8xf32>
    %3 = arith.truncf %2 : vector<16x8xf32> to vector<16x8xbf16>
    %4 = tpu.concatenate %0, %3 in 1 : vector<16x8xbf16>, vector<16x8xbf16> -> vector<16x16xbf16>
    %c0_3 = arith.constant 0 : index
    %c0_4 = arith.constant 0 : index
    %5 = vector.load %arg2[%c0_3, %c0_4] : memref<400x256xbf16, #tpu.memory_space<vmem>>, vector<16x256xbf16>
    %cst_5 = arith.constant dense<0.000000e+00> : vector<16x256xf32>
    %6 = tpu.matmul %4, %5, %cst_5 {dimension_numbers = #tpu.dot_dimension_numbers<[1], [0], [0], [1], [0, 0, 1, 1], [], []>} : vector<16x16xbf16>, vector<16x256xbf16>, vector<16x256xf32> -> vector<16x256xf32>
    %c0_6 = arith.constant 0 : index
    %c0_7 = arith.constant 0 : index
    %7 = vector.load %arg3[%c0_6, %c0_7] : memref<3x256xf32, #tpu.memory_space<vmem>>, vector<1x256xf32>
    %8 = vector.broadcast %7 : vector<1x256xf32> to vector<16x256xf32>
    %9 = arith.addf %6, %8 : vector<16x256xf32>
    %cst_8 = arith.constant 0.000000e+00 : f32
    %10 = vector.broadcast %cst_8 : f32 to vector<16x256xf32>
    %11 = arith.maximumf %9, %10 : vector<16x256xf32>
    %c16 = arith.constant 16 : index
    %c0_9 = arith.constant 0 : index
    %12 = vector.load %arg2[%c16, %c0_9] : memref<400x256xbf16, #tpu.memory_space<vmem>>, vector<256x256xbf16>
    %13 = arith.truncf %11 : vector<16x256xf32> to vector<16x256xbf16>
    %cst_10 = arith.constant dense<0.000000e+00> : vector<16x256xf32>
    %14 = tpu.matmul %13, %12, %cst_10 {dimension_numbers = #tpu.dot_dimension_numbers<[1], [0], [0], [1], [0, 0, 1, 1], [], []>} : vector<16x256xbf16>, vector<256x256xbf16>, vector<16x256xf32> -> vector<16x256xf32>
    %15 = vector.extract_strided_slice %14 {offsets = [0, 0], sizes = [16, 128], strides = [1, 1]} : vector<16x256xf32> to vector<16x128xf32>
    %16 = vector.extract_strided_slice %14 {offsets = [0, 128], sizes = [16, 128], strides = [1, 1]} : vector<16x256xf32> to vector<16x128xf32>
    %17 = arith.truncf %16 : vector<16x128xf32> to vector<16x128xbf16>
    %cst_11 = arith.constant dense<0.000000e+00> : vector<16x128xf32>
    %18 = tpu.matmul %1, %17, %cst_11 {dimension_numbers = #tpu.dot_dimension_numbers<[1], [0], [0], [1], [0, 0, 1, 1], [], []>} : vector<16x16xbf16>, vector<16x128xbf16>, vector<16x128xf32> -> vector<16x128xf32>
    %19 = arith.addf %15, %18 : vector<16x128xf32>
    %c1 = arith.constant 1 : index
    %c0_12 = arith.constant 0 : index
    %20 = vector.load %arg3[%c1, %c0_12] : memref<3x256xf32, #tpu.memory_space<vmem>>, vector<1x128xf32>
    %21 = vector.broadcast %20 : vector<1x128xf32> to vector<16x128xf32>
    %22 = arith.addf %19, %21 : vector<16x128xf32>
    %cst_13 = arith.constant 0.000000e+00 : f32
    %23 = vector.broadcast %cst_13 : f32 to vector<16x128xf32>
    %24 = arith.maximumf %22, %23 : vector<16x128xf32>
    %c272 = arith.constant 272 : index
    %c0_14 = arith.constant 0 : index
    %25 = vector.load %arg2[%c272, %c0_14] : memref<400x256xbf16, #tpu.memory_space<vmem>>, vector<128x256xbf16>
    %26 = arith.truncf %24 : vector<16x128xf32> to vector<16x128xbf16>
    %cst_15 = arith.constant dense<0.000000e+00> : vector<16x256xf32>
    %27 = tpu.matmul %26, %25, %cst_15 {dimension_numbers = #tpu.dot_dimension_numbers<[1], [0], [0], [1], [0, 0, 1, 1], [], []>} : vector<16x128xbf16>, vector<128x256xbf16>, vector<16x256xf32> -> vector<16x256xf32>
    %28 = vector.extract_strided_slice %27 {offsets = [0, 0], sizes = [16, 128], strides = [1, 1]} : vector<16x256xf32> to vector<16x128xf32>
    %29 = vector.extract_strided_slice %27 {offsets = [0, 128], sizes = [16, 128], strides = [1, 1]} : vector<16x256xf32> to vector<16x128xf32>
    %30 = arith.truncf %29 : vector<16x128xf32> to vector<16x128xbf16>
    %cst_16 = arith.constant dense<0.000000e+00> : vector<16x128xf32>
    %31 = tpu.matmul %1, %30, %cst_16 {dimension_numbers = #tpu.dot_dimension_numbers<[1], [0], [0], [1], [0, 0, 1, 1], [], []>} : vector<16x16xbf16>, vector<16x128xbf16>, vector<16x128xf32> -> vector<16x128xf32>
    %32 = arith.addf %28, %31 : vector<16x128xf32>
    %c2 = arith.constant 2 : index
    %c0_17 = arith.constant 0 : index
    %33 = vector.load %arg3[%c2, %c0_17] : memref<3x256xf32, #tpu.memory_space<vmem>>, vector<1x128xf32>
    %34 = vector.broadcast %33 : vector<1x128xf32> to vector<16x128xf32>
    %35 = arith.addf %32, %34 : vector<16x128xf32>
    %c0_18 = arith.constant 0 : index
    %c0_19 = arith.constant 0 : index
    %36 = vector.load %arg4[%c0_18, %c0_19] : memref<16x128xf32, #tpu.memory_space<vmem>>, vector<16x128xf32>
    tpu.vector_store %arg4[%c0_18, %c0_19], %35 {strides = array<i32>} : memref<16x128xf32, #tpu.memory_space<vmem>>, vector<16x128xf32>,
    return
  }
}

</mosaic_0001>

<bundles_post_ra>
// kernel: encoder_forward.1
= control target key start
LH: loop header
LB: loop body
LE: loop exit
PB: predicated region body
PF: predicated region fallthrough
CT: control target
= control target key end

     0   :  { %v809_v0 = vmov 0.0   ;;  %vm810_vm0 = vmmov 0   ;;  %vm33_vm1 = vcmask 130048   ;;  %v811_v5 = vmov 0   ;;  %s812_s11 = smov 8   ;;  %s1033_s0 = inlined_call_operand.vmem [shape: bf16[16,8], index: 0, kind: input, shape index: {}]   ;;  %s1034_s1 = inlined_call_operand.vmem [shape: bf16[16,16], index: 1, kind: input, shape index: {}]   ;;  %s1035_s2 = inlined_call_operand.vmem [shape: bf16[400,256], index: 2, kind: input, shape index: {}]   ;;  %s1036_s3 = inlined_call_operand.vmem [shape: f32[3,256], index: 3, kind: input, shape index: {}]   ;;  %s1037_s4 = inlined_call_operand.vmem [shape: f32[16,128], index: 4, kind: output, shape index: {}]  }
   0x1   :  { %710 = vmatprep.subr.bf16.mxu1 %v809_v0  ;;  %v842_v1 = vld [vmem:[%s1033_s0] sm:$0xff]   ;;  %712 = vmatprep.mubr.msk.bf16.mxu1 %vm810_vm0, %v809_v0  ;;  %v740_v8 = vld [vmem:[%s1035_s2 + $0x74] ss:$8 sps:$4 sm:$0xff]   ;;  %v742_v9 = vld [vmem:[%s1035_s2 + $0x70] ss:$8 sps:$4 sm:$0xff]   ;;  %vm82_vm2 = vcmask 64512   ;;  %v90_v45 = vlaneseq }
   0x2   :  { %v849_v2 = vld [vmem:[%s1034_s1] sm:$0xff]   ;;  %711 = vmatpush3.bf16.msra.mxu1 %v842_v1  ;;  %v746_v14 = vld [vmem:[%s1035_s2 + $0x54] ss:$8 sps:$4 sm:$0xff]   ;;  %v748_v18 = vld [vmem:[%s1035_s2 + $0x50] ss:$8 sps:$4 sm:$0xff]  }
   0x3   :  { %v734_v3 = vld [vmem:[%s1035_s2] ss:$8 sps:$4 sm:$0xff]   ;;  %v736_v4 = vld [vmem:[%s1035_s2 + $0x4] ss:$8 sps:$4 sm:$0xff]   ;;  %v752_v21 = vld [vmem:[%s1035_s2 + $0x34] ss:$8 sps:$4 sm:$0xff]  }
   0x4   :  { %126 = vmatprep.subr.bf16.mxu1 %v736_v4  ;;  %v737_v6 = vld [vmem:[%s1035_s2 + $0x84] ss:$8 sps:$4 sm:$0xff]   ;;  %v739_v7 = vld [vmem:[%s1035_s2 + $0x80] ss:$8 sps:$4 sm:$0xff]   ;;  %v754_v22 = vld [vmem:[%s1035_s2 + $0x30] ss:$8 sps:$4 sm:$0xff]  }
   0x5   :  { %713 = vmatmul.mubr.msk.bf16.vlgmr.msra.gmra.mxu1 %vm33_vm1, %v849_v2  ;;  %353 = vmatprep.subr.bf16.mxu0 %v737_v6  ;;  %v743_v10 = vld [vmem:[%s1035_s2 + $0x64] ss:$8 sps:$4 sm:$0xff]   ;;  %v745_v13 = vld [vmem:[%s1035_s2 + $0x60] ss:$8 sps:$4 sm:$0xff]   ;;  %v758_v25 = vld [vmem:[%s1035_s2 + $0x14] ss:$8 sps:$4 sm:$0xff]  }
   0x6   :  { %127 = vmatpush1.bf16.msra.mxu1 %v734_v3  ;;  %144 = vmatprep.mubr.bf16.mxu1 %v811_v5  ;;  %v749_v19 = vld [vmem:[%s1035_s2 + $0x44] ss:$8 sps:$4 sm:$0xff]   ;;  %v751_v20 = vld [vmem:[%s1035_s2 + $0x40] ss:$8 sps:$4 sm:$0xff]   ;;  %v760_v26 = vld [vmem:[%s1035_s2 + $0x10] ss:$8 sps:$4 sm:$0xff]  }
   0x7   :  { %716 = vmatprep.subr.bf16.mxu1 %v809_v0  ;;  %354 = vmatpush1.bf16.msra.mxu0 %v739_v7  ;;  %v755_v23 = vld [vmem:[%s1035_s2 + $0x24] ss:$8 sps:$4 sm:$0xff]   ;;  %v757_v24 = vld [vmem:[%s1035_s2 + $0x20] ss:$8 sps:$4 sm:$0xff]   ;;  %v764_v29 = vld [vmem:[%s1035_s2 + $0xf4] ss:$8 sps:$4 sm:$0xff]  }
   0x8   :  { %355 = vmatprep.subr.bf16.mxu0 %v740_v8  ;;  %v761_v27 = vld [vmem:[%s1035_s2 + $0x104] ss:$8 sps:$4 sm:$0xff]   ;;  %v763_v28 = vld [vmem:[%s1035_s2 + $0x100] ss:$8 sps:$4 sm:$0xff]   ;;  %v766_v30 = vld [vmem:[%s1035_s2 + $0xf0] ss:$8 sps:$4 sm:$0xff]  }
   0x9   :  { %v767_v31 = vld [vmem:[%s1035_s2 + $0xe4] ss:$8 sps:$4 sm:$0xff]   ;;  %v769_v32 = vld [vmem:[%s1035_s2 + $0xe0] ss:$8 sps:$4 sm:$0xff]   ;;  %v770_v33 = vld [vmem:[%s1035_s2 + $0xd4] ss:$8 sps:$4 sm:$0xff]  }
   0xa   :  { %v772_v34 = vld [vmem:[%s1035_s2 + $0xd0] ss:$8 sps:$4 sm:$0xff]   ;;  %v773_v35 = vld [vmem:[%s1035_s2 + $0xc4] ss:$8 sps:$4 sm:$0xff]   ;;  %v775_v36 = vld [vmem:[%s1035_s2 + $0xc0] ss:$8 sps:$4 sm:$0xff]  }
   0xb   :  { %356 = vmatpush1.bf16.msra.mxu0 %v742_v9  ;;  %v776_v39 = vld [vmem:[%s1035_s2 + $0xb4] ss:$8 sps:$4 sm:$0xff]   ;;  %v778_v40 = vld [vmem:[%s1035_s2 + $0xb0] ss:$8 sps:$4 sm:$0xff]   ;;  %v779_v41 = vld [vmem:[%s1035_s2 + $0xa4] ss:$8 sps:$4 sm:$0xff]  }
   0xc   :  { %357 = vmatprep.subr.bf16.mxu0 %v743_v10  ;;  %v781_v42 = vld [vmem:[%s1035_s2 + $0xa0] ss:$8 sps:$4 sm:$0xff]   ;;  %v782_v43 = vld [vmem:[%s1035_s2 + $0x94] ss:$8 sps:$4 sm:$0xff]   ;;  %v784_v44 = vld [vmem:[%s1035_s2 + $0x90] ss:$8 sps:$4 sm:$0xff]  }
   0xd   :  { %v91_v46 = vshrl.u32 %v90_v45, 7  ;;  %v88_v49 = vld [vmem:[%s1036_s3] ss:$4 sm:$0x3] }
   0xe   :  { %v787_v9 = vld [vmem:[%s1035_s2 + $0x184] ss:$8 sps:$4 sm:$0xff]  }
   0xf   :  { %358 = vmatpush1.bf16.msra.mxu0 %v745_v13  ;;  %v96_v47 = vsub.s32 1, %v91_v46  ;;  %v92_v48 = vsub.s32 0, %v91_v46  ;;  %v788_v13 = vld [vmem:[%s1035_s2 + $0x170] ss:$8 sps:$4 sm:$0xff]  }
  0x10   :  { %359 = vmatprep.subr.bf16.mxu0 %v746_v14  ;;  %v793_v14 = vld [vmem:[%s1035_s2 + $0x164] ss:$8 sps:$4 sm:$0xff]  }
  0x11   :  { %v97_v51 = vrot.slane %v88_v49, %v96_v47  ;;  %v93_v52 = vrot.slane %v88_v49, %v92_v48 }
  0x13   :  { %360 = vmatpush1.bf16.msra.mxu0 %v748_v18  ;;  %v797_v18 = vld [vmem:[%s1035_s2 + $0x140] ss:$8 sps:$4 sm:$0xff]  }
  0x14   :  { %361 = vmatprep.subr.bf16.mxu0 %v749_v19  ;;  %v802_v19 = vld [vmem:[%s1035_s2 + $0x134] ss:$8 sps:$4 sm:$0xff]  }
  0x17   :  { %362 = vmatpush1.bf16.msra.mxu0 %v751_v20  ;;  %v800_v20 = vld [vmem:[%s1035_s2 + $0x130] ss:$8 sps:$4 sm:$0xff]  }
  0x18   :  { %363 = vmatprep.subr.bf16.mxu0 %v752_v21  ;;  %v805_v21 = vld [vmem:[%s1035_s2 + $0x124] ss:$8 sps:$4 sm:$0xff]  }
  0x1b   :  { %364 = vmatpush1.bf16.msra.mxu0 %v754_v22  ;;  %v803_v22 = vld [vmem:[%s1035_s2 + $0x120] ss:$8 sps:$4 sm:$0xff]  }
  0x1c   :  { %365 = vmatprep.subr.bf16.mxu0 %v755_v23  ;;  %v808_v23 = vld [vmem:[%s1035_s2 + $0x114] ss:$8 sps:$4 sm:$0xff]  }
  0x1f   :  { %366 = vmatpush1.bf16.msra.mxu0 %v757_v24  ;;  %v806_v24 = vld [vmem:[%s1035_s2 + $0x110] ss:$8 sps:$4 sm:$0xff]  }
  0x20   :  { %367 = vmatprep.subr.bf16.mxu0 %v758_v25 }
  0x23   :  { %368 = vmatpush1.bf16.msra.mxu0 %v760_v26 }
  0x24   :  { %369 = vmatprep.subr.bf16.mxu0 %v761_v27  ;;  %v685_v27 = vld [vmem:[%s1036_s3 + $0x1] ss:$0 sm:$0xff] }
  0x27   :  { %370 = vmatpush2.bf16.msra.mxu0 %v763_v28 }
  0x28   :  { %371 = vmatprep.subr.bf16.mxu0 %v764_v29 }
  0x2b   :  { %372 = vmatpush2.bf16.msra.mxu0 %v766_v30 }
  0x2c   :  { %373 = vmatprep.subr.bf16.mxu0 %v767_v31 }
  0x2f   :  { %374 = vmatpush2.bf16.msra.mxu0 %v769_v32 }
  0x30   :  { %375 = vmatprep.subr.bf16.mxu0 %v770_v33 }
  0x33   :  { %376 = vmatpush2.bf16.msra.mxu0 %v772_v34 }
  0x34   :  { %377 = vmatprep.subr.bf16.mxu0 %v773_v35 }
  0x37   :  { %378 = vmatpush2.bf16.msra.mxu0 %v775_v36 }
  0x38   :  { %379 = vmatprep.subr.bf16.mxu0 %v776_v39 }
  0x3b   :  { %380 = vmatpush2.bf16.msra.mxu0 %v778_v40 }
  0x3c   :  { %381 = vmatprep.subr.bf16.mxu0 %v779_v41 }
  0x3f   :  { %382 = vmatpush2.bf16.msra.mxu0 %v781_v42 }
  0x40   :  { %383 = vmatprep.subr.bf16.mxu0 %v782_v43  ;;  %v703_v43 = vld [vmem:[%s1036_s3 + $0x2] ss:$0 sm:$0xff] }
  0x43   :  { %384 = vmatpush2.bf16.msra.mxu0 %v784_v44 }
  0xc5   :  { %v71_v11 = vpop.f32.mrf.mxu1 }
  0xc7   :  { %v714_v12 = vpop.f32.mrf.mxu1 }
  0xc8   :  { %v790_v12 = vld [vmem:[%s1035_s2 + $0x174] ss:$8 sps:$4 sm:$0xff]  }
  0xc9   :  { %v74_v15 = vpop.f32.mrf.mxu1 }
  0xca   :  { %v78_v16 = vpack.c.bf16 %v74_v15, %v71_v11  ;;  %v785_v11 = vld [vmem:[%s1035_s2 + $0x180] ss:$8 sps:$4 sm:$0xff]  }
  0xcb   :  { %v715_v17 = vpop.f32.mrf.mxu1  ;;  %v791_v15 = vld [vmem:[%s1035_s2 + $0x160] ss:$8 sps:$4 sm:$0xff]  }
  0xcc   :  { %80 = vrot.lane.b32.xlu0 %v78_v16, %s812_s11  ;;  %v796_v16 = vld [vmem:[%s1035_s2 + $0x154] ss:$8 sps:$4 sm:$0xff]   ;;  %v799_v17 = vld [vmem:[%s1035_s2 + $0x144] ss:$8 sps:$4 sm:$0xff]  }
 0x13e   :  { %v81_v37 = vpop.permute.xlu0 %80 }
 0x13f   :  { %v85_v38 = vsel %vm82_vm2, %v842_v1, %v81_v37 }
 0x140   :  { %651 = vmatmul.mubr.msk.bf16.vlgmr.msra.gmra.mxu1 %vm33_vm1, %v85_v38 }
 0x141   :  { %718 = vmatprep.mubr.msk.bf16.mxu1 %vm810_vm0, %v809_v0 }
 0x200   :  { %v146_v50 = vpop.f32.mrf.mxu1 }
 0x201   :  { %v147_v57 = vadd.f32 %v146_v50, %v93_v52 }
 0x202   :  { %v148_v53 = vpop.f32.mrf.mxu1 }
 0x203   :  { %v149_v55 = vadd.f32 %v148_v53, %v97_v51  ;;  %v155_v63 = vmax.f32 %v147_v57, 0.0 }
 0x204   :  { %v150_v54 = vpop.f32.mrf.mxu1 }
 0x205   :  { %v151_v56 = vadd.f32 %v150_v54, %v93_v52  ;;  %v156_v61 = vmax.f32 %v149_v55, 0.0 }
 0x206   :  { %v152_v58 = vpop.f32.mrf.mxu1 }
 0x207   :  { %v153_v59 = vadd.f32 %v152_v58, %v97_v51  ;;  %v157_v60 = vmax.f32 %v151_v56, 0.0 }
 0x209   :  { %v158_v62 = vmax.f32 %v153_v59, 0.0  ;;  %v191_v3 = vpack.c.bf16 %v157_v60, %v155_v63 }
 0x20b   :  { %v192_v1 = vpack.c.bf16 %v158_v62, %v156_v61 }
 0x20d   :  { %385 = vmatprep.mubr.bf16.mxu0 %v192_v1 }
 0x20e   :  { %386 = vmatmul.mubr.bf16.vlgmr.msra.gmra.mxu0 %v191_v3 }
 0x2ce   :  { %v387_v4 = vpop.f32.mrf.mxu0 }
 0x2d0   :  { %v389_v6 = vpop.f32.mrf.mxu0 }
 0x2d2   :  { %v391_v7 = vpop.f32.mrf.mxu0 }
 0x2d4   :  { %v393_v8 = vpop.f32.mrf.mxu0 }
 0x2d5   :  { %v396_v10 = vpack.c.bf16 %v393_v8, %v389_v6 }
 0x2d7   :  { %717 = vmatpush3.bf16.msra.mxu1 %v396_v10 }
 0x2d8   :  { %546 = vmatprep.subr.bf16.mxu1 %v787_v9 }
 0x2da   :  { %719 = vmatmul.mubr.msk.bf16.vlgmr.msra.gmra.mxu1 %vm33_vm1, %v849_v2 }
 0x2db   :  { %547 = vmatpush1.bf16.msra.mxu1 %v785_v11  ;;  %578 = vmatprep.mubr.bf16.mxu1 %v811_v5  ;;  %v794_v5 = vld [vmem:[%s1035_s2 + $0x150] ss:$8 sps:$4 sm:$0xff]  }
 0x2dc   :  { %548 = vmatprep.subr.bf16.mxu1 %v790_v12 }
 0x2df   :  { %549 = vmatpush1.bf16.msra.mxu1 %v788_v13 }
 0x2e0   :  { %550 = vmatprep.subr.bf16.mxu1 %v793_v14 }
 0x2e3   :  { %551 = vmatpush1.bf16.msra.mxu1 %v791_v15 }
 0x2e4   :  { %552 = vmatprep.subr.bf16.mxu1 %v796_v16 }
 0x2e7   :  { %553 = vmatpush1.bf16.msra.mxu1 %v794_v5 }
 0x2e8   :  { %554 = vmatprep.subr.bf16.mxu1 %v799_v17 }
 0x2eb   :  { %555 = vmatpush1.bf16.msra.mxu1 %v797_v18 }
 0x2ec   :  { %556 = vmatprep.subr.bf16.mxu1 %v802_v19 }
 0x2ef   :  { %557 = vmatpush1.bf16.msra.mxu1 %v800_v20 }
 0x2f0   :  { %558 = vmatprep.subr.bf16.mxu1 %v805_v21 }
 0x2f3   :  { %559 = vmatpush1.bf16.msra.mxu1 %v803_v22 }
 0x2f4   :  { %560 = vmatprep.subr.bf16.mxu1 %v808_v23 }
 0x2f7   :  { %561 = vmatpush1.bf16.msra.mxu1 %v806_v24 }
 0x2f8   :  { %722 = vmatprep.subr.bf16.mxu1 %v809_v0 }
 0x39a   :  { %v431_v25 = vpop.f32.mrf.mxu1 }
 0x39b   :  { %v438_v26 = vadd.f32 %v431_v25, %v387_v4 }
 0x39c   :  { %v720_v28 = vpop.f32.mrf.mxu1 }
 0x39d   :  { %v445_v30 = vadd.f32 %v685_v27, %v438_v26 }
 0x39e   :  { %v434_v29 = vpop.f32.mrf.mxu1 }
 0x39f   :  { %v439_v31 = vadd.f32 %v434_v29, %v391_v7  ;;  %v447_v34 = vmax.f32 %v445_v30, 0.0 }
 0x3a0   :  { %v721_v32 = vpop.f32.mrf.mxu1 }
 0x3a1   :  { %v446_v33 = vadd.f32 %v685_v27, %v439_v31 }
 0x3a3   :  { %v448_v35 = vmax.f32 %v446_v33, 0.0 }
 0x3a5   :  { %v465_v36 = vpack.c.bf16 %v448_v35, %v447_v34 }
 0x3a7   :  { %579 = vmatmul.mubr.bf16.vlgmr.msra.gmra.mxu1 %v465_v36 }
 0x3a8   :  { %724 = vmatprep.mubr.msk.bf16.mxu1 %vm810_vm0, %v809_v0 }
 0x467   :  { %v580_v37 = vpop.f32.mrf.mxu1 }
 0x469   :  { %v582_v38 = vpop.f32.mrf.mxu1 }
 0x46b   :  { %v584_v39 = vpop.f32.mrf.mxu1 }
 0x46d   :  { %v586_v40 = vpop.f32.mrf.mxu1 }
 0x46e   :  { %v589_v41 = vpack.c.bf16 %v586_v40, %v582_v38 }
 0x470   :  { %723 = vmatpush3.bf16.msra.mxu1 %v589_v41 }
 0x473   :  { %725 = vmatmul.mubr.msk.bf16.vlgmr.msra.gmra.mxu1 %vm33_vm1, %v849_v2 }
 0x533   :  { %v624_v42 = vpop.f32.mrf.mxu1 }
 0x534   :  { %v631_v44 = vadd.f32 %v624_v42, %v580_v37 }
 0x535   :  { %v726_v45 = vpop.f32.mrf.mxu1 }
 0x536   :  { %v638_v46 = vadd.f32 %v703_v43, %v631_v44 }
 0x537   :  { %v627_v47 = vpop.f32.mrf.mxu1 }
 0x538   :  { %640 = vst [vmem:[%s1037_s4] sm:$0xff] %v638_v46  ;;  %v632_v0 = vadd.f32 %v627_v47, %v584_v39 }
 0x539   :  { %v727_v48 = vpop.f32.mrf.mxu1 }
 0x53a   :  { %v639_v49 = vadd.f32 %v703_v43, %v632_v0 }
 0x53c   :  { %641 = vst [vmem:[%s1037_s4 + $0x8] sm:$0xff] %v639_v49 }

</bundles_post_ra>
